<compile_context>
chip_gen: v7x
topology: tpu7x:2x2x1
jax: 0.10.0
libtpu: 0.0.40
codegen_flags: <defaults>
</compile_context>

<pallas_src>
import functools
import math

import jax
import jax.numpy as jnp
from jax.experimental import pallas as pl
from jax.experimental.pallas import tpu as pltpu


def _rmsnorm_kernel(g_ref, x_ref, o_ref, *, scale, eps):
    # g_ref: (1,) f32 in SMEM    x_ref/o_ref: (TM, D) in VMEM
    x = x_ref[...].astype(jnp.float32)                      # (TM, D)
    sq = jnp.sum(x * x, axis=-1, keepdims=True)             # (TM, 1)
    denom = jnp.maximum(jnp.sqrt(sq), eps)                  # matches F.normalize eps clamp
    inv = (scale * g_ref[0]) / denom                        # (TM, 1)
    o_ref[...] = (x * inv).astype(o_ref.dtype)


def rmsnorm(x, g, *, eps=1e-12):
    """x: (..., D); g: scalar (or shape-(1,)) gain. Returns same shape/dtype as x."""
    orig_shape = x.shape
    orig_dtype = x.dtype
    D = orig_shape[-1]
    N = math.prod(orig_shape[:-1]) if len(orig_shape) > 1 else 1

    x2 = x.reshape(N, D).astype(jnp.float32)

    # Pad rows to a multiple of 8 so all tiles are full sublane tiles.
    n_pad = (-N) % 8
    if n_pad:
        x2 = jnp.pad(x2, ((0, n_pad), (0, 0)))
    N_pad = N + n_pad

    # Largest convenient row tile that evenly divides the padded row count.
    TM = 8
    for cand in (512, 256, 128, 64, 32, 16, 8):
        if N_pad % cand == 0:
            TM = cand
            break

    g_smem = jnp.asarray(g, jnp.float32).reshape(1)

    out = pl.pallas_call(
        functools.partial(_rmsnorm_kernel, scale=float(D) ** 0.5, eps=float(eps)),
        out_shape=jax.ShapeDtypeStruct((N_pad, D), orig_dtype),
        grid=(N_pad // TM,),
        in_specs=[
            pl.BlockSpec(memory_space=pltpu.MemorySpace.SMEM),   # g (scalar)
            pl.BlockSpec((TM, D), lambda i: (i, 0)),             # x row tile
        ],
        out_specs=pl.BlockSpec((TM, D), lambda i: (i, 0)),
        compiler_params=pltpu.CompilerParams(
            dimension_semantics=("parallel",)),
    )(g_smem, x2)

    if n_pad:
        out = out[:N]
    return out.reshape(orig_shape)


def _reference(x, g, *, eps=1e-12):
    # F.normalize(x, dim=-1) * sqrt(dim) * g
    norm = jnp.sqrt(jnp.sum(jnp.square(x.astype(jnp.float32)), axis=-1, keepdims=True))
    scale = x.shape[-1] ** 0.5
    return (x.astype(jnp.float32) / jnp.maximum(norm, eps) * scale
            * jnp.asarray(g, jnp.float32)).astype(x.dtype)


if __name__ == "__main__":
    B, S, D = 2, 8, 256   # DiT-style tokens: (batch, seq, hidden)

    key = jax.random.PRNGKey(0)
    k_x, k_g = jax.random.split(key, 2)

    x = jax.random.normal(k_x, (B, S, D), dtype=jnp.float32)
    # nn.Parameter(torch.ones(1)) initializes to 1; perturb it so the gain path is tested.
    g = 1.0 + 0.1 * jax.random.normal(k_g, (1,), dtype=jnp.float32)

    out = rmsnorm(x, g)
    out = jax.block_until_ready(out)

    ref = _reference(x, g)
    assert out.shape == x.shape, out.shape
    assert out.dtype == x.dtype, out.dtype
    err = float(jnp.max(jnp.abs(out - ref)))
    assert jnp.allclose(out, ref, atol=1e-4, rtol=1e-4), err

    print("KERNEL_OK")
</pallas_src>

<mosaic_0001>
module attributes {stable_mosaic.version = 11 : i64} {
  func.func @_rmsnorm_kernel(%arg0: i32, %arg1: memref<1xf32, #tpu.memory_space<smem>>, %arg2: memref<16x256xf32, #tpu.memory_space<vmem>>, %arg3: memref<16x256xf32, #tpu.memory_space<vmem>>) attributes {dimension_semantics = [#tpu.dimension_semantics<parallel>], iteration_bounds = array<i64: 1>, scalar_prefetch = 0 : i64, scratch_operands = 0 : i64, tpu.core_type = #tpu.core_type<tc>, window_params = [{transform_indices = @transform_0, window_bounds = array<i64: 1>}, {transform_indices = @transform_1, window_bounds = array<i64: 16, 256>}, {transform_indices = @transform_2, window_bounds = array<i64: 16, 256>}]} {
    %c0 = arith.constant 0 : index
    %c0_0 = arith.constant 0 : index
    %0 = vector.load %arg2[%c0, %c0_0] : memref<16x256xf32, #tpu.memory_space<vmem>>, vector<16x256xf32>
    %1 = arith.mulf %0, %0 : vector<16x256xf32>
    %cst = arith.constant dense<0.000000e+00> : vector<16xf32>
    %2 = vector.multi_reduction <add>, %1, %cst [1] : vector<16x256xf32> to vector<16xf32>
    %3 = vector.shape_cast %2 : vector<16xf32> to vector<16x1xf32>
    %4 = math.sqrt %3 : vector<16x1xf32>
    %cst_1 = arith.constant 9.99999996E-13 : f32
    %5 = vector.broadcast %cst_1 : f32 to vector<16x1xf32>
    %6 = arith.maximumf %4, %5 : vector<16x1xf32>
    %c0_2 = arith.constant 0 : index
    %7 = memref.load %arg1[%c0_2] : memref<1xf32, #tpu.memory_space<smem>>
    %cst_3 = arith.constant 1.600000e+01 : f32
    %8 = arith.mulf %cst_3, %7 : f32
    %9 = vector.broadcast %8 : f32 to vector<16x1xf32>
    %10 = arith.divf %9, %6 : vector<16x1xf32>
    %11 = vector.broadcast %10 : vector<16x1xf32> to vector<16x256xf32>
    %12 = arith.mulf %0, %11 : vector<16x256xf32>
    %c0_4 = arith.constant 0 : index
    %c0_5 = arith.constant 0 : index
    %13 = vector.load %arg3[%c0_4, %c0_5] : memref<16x256xf32, #tpu.memory_space<vmem>>, vector<16x256xf32>
    tpu.vector_store %arg3[%c0_4, %c0_5], %12 {strides = array<i32>} : memref<16x256xf32, #tpu.memory_space<vmem>>, vector<16x256xf32>,
    return
  }
  func.func @transform_0(%arg0: i32) -> i32 {
    %c0_i32 = arith.constant 0 : i32
    %c0_i32_0 = arith.constant 0 : i32
    return %c0_i32 : i32
  }
  func.func @transform_1(%arg0: i32) -> (i32, i32) {
    %c0_i32 = arith.constant 0 : i32
    %c0_i32_0 = arith.constant 0 : i32
    return %arg0, %c0_i32 : i32, i32
  }
  func.func @transform_2(%arg0: i32) -> (i32, i32) {
    %c0_i32 = arith.constant 0 : i32
    %c0_i32_0 = arith.constant 0 : i32
    return %arg0, %c0_i32 : i32, i32
  }
}

</mosaic_0001>

<bundles_post_ra>
// kernel: tpu_custom_call.1
= control target key start
LH: loop header
LB: loop body
LE: loop exit
PB: predicated region body
PF: predicated region fallthrough
CT: control target
= control target key end

     0   :  { %8 = vsyncpa [#allocation4], 0  ;;  %s201_s0 = inlined_call_operand.<no memory space> [shape: f32[1], index: 0, kind: input, shape index: {}]   ;;  %s202_s1 = inlined_call_operand.hbm [shape: f32[16,256], index: 1, kind: input, shape index: {}]   ;;  %s203_s2 = inlined_call_operand.hbm [shape: f32[16,256], index: 2, kind: output, shape index: {}]  }
   0x1   :  { %9 = vsyncpa [#allocation5], 0  ;;  %s149_s9 = smov [#allocation3]   ;;  %s101_s13 = scalar_lea.hbm %s202_s1, 512 }
   0x2   :  { %s17_s10 = sshll.u32 %s149_s9, 4  ;;  %p102_p0 = scmp.ne.s32.totalorder %s202_s1, %s101_s13  ;;  %s18_s10 = int_to_ptr.vmem [resolvable:$true] %s17_s10 }
   0x3   :  { %p105_p1 = scmp.lt.u32.totalorder %s101_s13, %s202_s1 }
   0x5   :  { %p107_p2 = pnand %p105_p1, %p102_p0 }
   0x7   :  { %110 = shalt.err (!%p107_p2)
}
   0x8   :  { %s111_s18 = scalar_lea.vmem %s18_s10, 512  ;;  %p116_p4 = scmp.lt.s32.totalorder %s18_s10, %s18_s10 }
   0x9   :  { %p112_p3 = scmp.ne.s32.totalorder %s18_s10, %s111_s18  ;;  %p117_p5 = scmp.lt.s32.totalorder %s111_s18, %s111_s18 }
   0xb   :  { %p118_p6 = por %p117_p5, %p116_p4 }
   0xd   :  { %p119_p7 = pnand %p118_p6, %p112_p3 }
   0xf   :  { %122 = shalt.err (!%p119_p7)
}
  0x10   :  { %s150_s19 = smov 256   ;;  %s151_s20 = smov 16  }
  0x11   :  { %23 = dma.hbm_to_vmem [thread:$0]  %s202_s1, 512, %s18_s10, [#allocation4], %s150_s19, %s150_s19, %s151_s20  }
  0x12   :  { %145 = dma.done.wait [#allocation4], 512  }
  0x13   :  { %146 = vsyncadd [#allocation4], 4294966784  ;;  %v27_v0 = vld [vmem:[#allocation3] sm:$0xff]  ;;  %v28_v1 = vld [vmem:[#allocation3 + $0x8] sm:$0xff]  ;;  %s58_s24 = smul.f32 16.0, %s201_s0  ;;  %s152_s25 = smov [#allocation6]  }
  0x14   :  { %v29_v2 = vld [vmem:[#allocation3 + $0x10] sm:$0xff]  ;;  %v31_v3 = vmul.f32 %v27_v0, %v27_v0  ;;  %v32_v4 = vmul.f32 %v28_v1, %v28_v1  ;;  %v30_v5 = vld [vmem:[#allocation3 + $0x18] sm:$0xff]  ;;  %s77_s26 = sshll.u32 %s152_s25, 4  ;;  %s78_s26 = int_to_ptr.vmem [resolvable:$true] %s77_s26 }
  0x15   :  { %v33_v6 = vmul.f32 %v29_v2, %v29_v2  ;;  %v34_v7 = vmul.f32 %v30_v5, %v30_v5  ;;  %v59_v24 = vstv %s58_s24  ;;  %s123_s27 = scalar_lea.vmem %s78_s26, 512  ;;  %p128_p9 = scmp.lt.s32.totalorder %s78_s26, %s78_s26 }
  0x16   :  { %v35_v8 = vadd.f32 %v32_v4, %v31_v3  ;;  %p124_p8 = scmp.ne.s32.totalorder %s78_s26, %s123_s27  ;;  %p129_p10 = scmp.lt.s32.totalorder %s123_s27, %s123_s27 }
  0x17   :  { %v38_v9 = vadd.f32 %v34_v7, %v33_v6 }
  0x18   :  { %36 = vadd.xlane.f32.xlu0 %v35_v8  ;;  %p130_p11 = por %p129_p10, %p128_p9 }
  0x1a   :  { %p131_p12 = pnand %p130_p11, %p124_p8 }
  0x1c   :  { %39 = vadd.xlane.f32.xlu0 %v38_v9 }
  0xa5   :  { %v37_v10 = vpop.xlane.xlu0 %36 }
  0xa6   :  { %93 = vrsqrt.f32 %v37_v10  ;;  %vm43_vm0 = vcmp.eq.f32.partialorder %v37_v10, inf  ;;  %v46_v14 = vand.u32 2147483648, %v37_v10  ;;  %vm45_vm1 = vcmp.eq.f32.partialorder %v37_v10, 0.0 }
  0xa9   :  { %v40_v11 = vpop.xlane.xlu0 %39 }
  0xaa   :  { %95 = vrsqrt.f32 %v40_v11  ;;  %vm50_vm2 = vcmp.eq.f32.partialorder %v40_v11, inf  ;;  %v53_v20 = vand.u32 2147483648, %v40_v11  ;;  %vm52_vm3 = vcmp.eq.f32.partialorder %v40_v11, 0.0 }
  0xb0   :  { %v94_v12 = vpop.eup %93 }
  0xb1   :  { %v42_v13 = vmul.f32 %v94_v12, %v37_v10 }
  0xb3   :  { %v44_v15 = vsel %vm43_vm0, %v37_v10, %v42_v13 }
  0xb4   :  { %v96_v16 = vpop.eup %95  ;;  %v47_v17 = vsel %vm45_vm1, %v46_v14, %v44_v15 }
  0xb5   :  { %v55_v18 = vmax.f32 %v47_v17, 1e-12  ;;  %v49_v19 = vmul.f32 %v96_v16, %v40_v11 }
  0xb7   :  { %97 = vrcp.f32 %v55_v18  ;;  %v51_v21 = vsel %vm50_vm2, %v40_v11, %v49_v19 }
  0xb8   :  { %v54_v22 = vsel %vm52_vm3, %v53_v20, %v51_v21 }
  0xb9   :  { %v56_v23 = vmax.f32 %v54_v22, 1e-12 }
  0xbb   :  { %99 = vrcp.f32 %v56_v23 }
  0xc1   :  { %v98_v25 = vpop.eup %97 }
  0xc2   :  { %v61_v26 = vmul.f32 %v98_v25, %v59_v24 }
  0xc4   :  { %v64_v27 = vmul.f32 %v61_v26, %v27_v0  ;;  %v65_v28 = vmul.f32 %v61_v26, %v28_v1 }
  0xc5   :  { %v100_v29 = vpop.eup %99 }
  0xc6   :  { %v63_v30 = vmul.f32 %v100_v29, %v59_v24  ;;  %68 = vst [vmem:[#allocation6] sm:$0xff] %v64_v27  ;;  %69 = vst [vmem:[#allocation6 + $0x8] sm:$0xff] %v65_v28 }
  0xc8   :  { %v66_v31 = vmul.f32 %v63_v30, %v29_v2  ;;  %v67_v32 = vmul.f32 %v63_v30, %v30_v5 }
  0xca   :  { %70 = vst [vmem:[#allocation6 + $0x10] sm:$0xff] %v66_v31  ;;  %71 = vst [vmem:[#allocation6 + $0x18] sm:$0xff] %v67_v32 }
  0xcb   :  { %134 = shalt.err (!%p131_p12)
}
  0xcc   :  { %s135_s29 = scalar_lea.hbm %s203_s2, 512 }
  0xcd   :  { %p136_p13 = scmp.ne.s32.totalorder %s203_s2, %s135_s29  ;;  %p139_p0 = scmp.lt.u32.totalorder %s135_s29, %s203_s2 }
  0xcf   :  { %p141_p1 = pnand %p139_p0, %p136_p13 }
  0xd1   :  { %144 = shalt.err (!%p141_p1)
}
  0xd2   :  { %83 = dma.vmem_to_hbm [thread:$0]  %s78_s26, 512, %s203_s2, [#allocation5], %s150_s19, %s150_s19, %s151_s20  }
  0xd3   :  { %147 = dma.done.wait [#allocation5], 512  }
  0xd4   :  { %148 = vsyncadd [#allocation5], 4294966784 }
  0xd5   :  { %87 = vsyncpa [#allocation4], 1 }
  0xd6   :  { %88 = vsyncpa [#allocation5], 1 }

</bundles_post_ra>
